<compile_context>
chip_gen: v5e
topology: v5e:2x2
jax: 0.10.0
libtpu: 0.0.40
codegen_flags: <defaults>
</compile_context>

<pallas_src>
import functools
import math

import jax
import jax.numpy as jnp
from jax.experimental import pallas as pl
from jax.experimental.pallas import tpu as pltpu


_LANE_W = 512                            # lane-dense tile width (multiple of 128)
_TARGET_TILE_BYTES = 2 * 1024 * 1024     # ~2 MiB per input tile
_MIN_BLOCK_ROWS = 256                    # >=512 KiB tiles (roofline regime)
_MIN_GRID_STEPS = 4                      # let v7x shard the grid across its 2 TCs
_MIN_PALLAS_ELEMS = 64 * 1024            # below this, fused XLA path wins


def _round_up(a, b):
    return ((a + b - 1) // b) * b


def _int_power(u, p):
    """u**p via exponentiation-by-squaring; p is a static python int >= 0."""
    n = int(p)
    if n == 0:
        return jnp.ones_like(u)
    result = None
    base = u
    while n > 0:
        if n & 1:
            result = base if result is None else result * base
        n >>= 1
        if n:
            base = base * base
    return result


def _poly_eval(x, p, r_max):
    """DimeNet polynomial cutoff, computed in (at least) f32, cast back to x.dtype."""
    compute_dtype = jnp.promote_types(x.dtype, jnp.float32)
    xf = x.astype(compute_dtype)
    pf = float(p)
    a = (pf + 1.0) * (pf + 2.0) / 2.0
    b = pf * (pf + 2.0)
    c = pf * (pf + 1.0) / 2.0
    u = xf * (1.0 / float(r_max))          # reciprocal-multiply (precomputed at trace time)
    up = _int_power(u, int(p))             # u**p (3 muls for p = 6)
    # envelope = 1 - a*u^p + b*u^(p+1) - c*u^(p+2) = 1 + u^p * (-a + u*(b - c*u))
    env = 1.0 + up * (-a + u * (b - c * u))
    # envelope * (x < r_max)  — compare on u so the original-dtype vreg is released early
    return jnp.where(u < 1.0, env, 0.0).astype(x.dtype)


def _poly_cutoff_kernel(x_ref, o_ref, *, p, r_max):
    """Elementwise DimeNet polynomial cutoff on one VMEM tile."""
    o_ref[...] = _poly_eval(x_ref[...], p, r_max)


def polynomial_cutoff(x, r_max, p=6, *, min_pallas_elems=_MIN_PALLAS_ELEMS):
    """Apply PolynomialCutoff elementwise (Pallas TPU kernel for large inputs).

    x:     jnp.ndarray of distances, any shape, float dtype.
    r_max: float cutoff radius (torch buffer), or None -> ones_like(x).
    p:     int polynomial order (torch buffer, default 6).
    """
    if r_max is None:
        return jnp.ones_like(x)

    total = int(math.prod(x.shape)) if x.shape else 1

    # Small-input fast path: one fused XLA elementwise kernel, no wrapper copies.
    if total == 0 or total < min_pallas_elems:
        return _poly_eval(x, p, r_max)

    orig_shape = x.shape
    dtype = x.dtype
    itemsize = jnp.dtype(dtype).itemsize
    # min sublane packing: 8 for 4-byte, 16 for 2-byte, 32 for 1-byte dtypes
    sublane = max(8, 32 // itemsize)
    lane_w = _LANE_W

    flat = x.reshape(-1)
    rem = total % lane_w
    if rem:
        # Ragged tail: pad only to the next lane multiple (<= 511 extra elements).
        flat = jnp.pad(flat, (0, lane_w - rem))
    rows = flat.shape[0] // lane_w
    slab = flat.reshape(rows, lane_w)      # no-copy reshape when rem == 0

    # Block rows: ~2 MiB tiles, multiple of `sublane`, capped so big inputs get
    # >= _MIN_GRID_STEPS grid steps (v7x cross-TC sharding), floored at
    # _MIN_BLOCK_ROWS rows to stay in the high-roofline tile regime.
    max_block_rows = _round_up(max(_TARGET_TILE_BYTES // (lane_w * itemsize), sublane), sublane)
    block_rows = min(max_block_rows, _round_up(pl.cdiv(rows, _MIN_GRID_STEPS), sublane))
    block_rows = max(block_rows, min(_MIN_BLOCK_ROWS, max_block_rows))
    if block_rows >= rows:
        block_rows = rows                  # single full-extent block (any row count is legal)
    grid = (pl.cdiv(rows, block_rows),)    # partial last block is masked by Pallas

    kernel = functools.partial(_poly_cutoff_kernel, p=int(p), r_max=float(r_max))

    out = pl.pallas_call(
        kernel,
        out_shape=jax.ShapeDtypeStruct(slab.shape, dtype),
        grid=grid,
        in_specs=[pl.BlockSpec((block_rows, lane_w), lambda i: (i, 0))],
        out_specs=pl.BlockSpec((block_rows, lane_w), lambda i: (i, 0)),
        compiler_params=pltpu.CompilerParams(
            dimension_semantics=("parallel",),
            vmem_limit_bytes=32 * 1024 * 1024,
        ),
        cost_estimate=pl.CostEstimate(
            flops=12 * slab.size,
            transcendentals=0,
            bytes_accessed=2 * slab.size * itemsize,
        ),
    )(slab)

    if rem:
        out = out.reshape(-1)[:total]
    return out.reshape(orig_shape)


def polynomial_cutoff_ref(x, r_max, p=6):
    """Pure-JAX reference matching the torch forward exactly."""
    if r_max is None:
        return jnp.ones_like(x)
    pf = float(p)
    u = x / r_max
    envelope = (
        1.0
        - (pf + 1.0) * (pf + 2.0) / 2.0 * jnp.power(u, pf)
        + pf * (pf + 2.0) * jnp.power(u, pf + 1.0)
        - pf * (pf + 1.0) / 2.0 * jnp.power(u, pf + 2.0)
    )
    return envelope * (x < r_max).astype(x.dtype)


if __name__ == "__main__":
    # Deterministic "parameters" (torch buffers): r_max and p.
    r_max = 5.0
    p = 6

    key = jax.random.PRNGKey(0)
    k1, k2, k3 = jax.random.split(key, 3)

    # Small edge-list-like input: default call takes the fused fast path.
    x_small = jax.random.uniform(k1, (16, 128), dtype=jnp.float32) * (1.5 * r_max)
    out_fast = jax.block_until_ready(polynomial_cutoff(x_small, r_max, p))
    # Same input forced through the Pallas kernel (single full-extent block, no pad).
    out_pallas = jax.block_until_ready(
        polynomial_cutoff(x_small, r_max, p, min_pallas_elems=0))
    ref_small = polynomial_cutoff_ref(x_small, r_max, p)
    assert out_fast.shape == x_small.shape and out_fast.dtype == x_small.dtype
    assert jnp.allclose(out_fast, ref_small, atol=5e-5, rtol=1e-5), "fast path mismatch"
    assert jnp.allclose(out_pallas, ref_small, atol=5e-5, rtol=1e-5), "pallas mismatch"

    # Ragged size (total % 512 != 0): exercises the <=511-element pad + tail slice.
    x_ragged = jax.random.uniform(k2, (37, 53), dtype=jnp.float32) * (1.5 * r_max)
    out_rag = jax.block_until_ready(
        polynomial_cutoff(x_ragged, r_max, p, min_pallas_elems=0))
    assert jnp.allclose(out_rag, polynomial_cutoff_ref(x_ragged, r_max, p),
                        atol=5e-5, rtol=1e-5), "ragged mismatch"

    # Lane-divisible size with >1 grid steps and a masked partial last block.
    x_med = jax.random.uniform(k3, (300, 512), dtype=jnp.float32) * (1.5 * r_max)
    out_med = jax.block_until_ready(
        polynomial_cutoff(x_med, r_max, p, min_pallas_elems=0))
    assert jnp.allclose(out_med, polynomial_cutoff_ref(x_med, r_max, p),
                        atol=5e-5, rtol=1e-5), "partial-block mismatch"

    print("KERNEL_OK")
</pallas_src>

<mosaic_0001>
module attributes {stable_mosaic.version = 11 : i64} {
  func.func @_poly_cutoff_kernel(%arg0: i32, %arg1: memref<4x512xf32, #tpu.memory_space<vmem>>, %arg2: memref<4x512xf32, #tpu.memory_space<vmem>>) attributes {dimension_semantics = [#tpu.dimension_semantics<parallel>], iteration_bounds = array<i64: 1>, scalar_prefetch = 0 : i64, scratch_operands = 0 : i64, tpu.core_type = #tpu.core_type<tc>, window_params = [{transform_indices = @transform_0, window_bounds = array<i64: 4, 512>}, {transform_indices = @transform_1, window_bounds = array<i64: 4, 512>}]} {
    %c0 = arith.constant 0 : index
    %c0_0 = arith.constant 0 : index
    %0 = vector.load %arg1[%c0, %c0_0] : memref<4x512xf32, #tpu.memory_space<vmem>>, vector<4x512xf32>
    %cst = arith.constant 2.000000e-01 : f32
    %1 = vector.broadcast %cst : f32 to vector<4x512xf32>
    %2 = arith.mulf %0, %1 : vector<4x512xf32>
    %3 = arith.mulf %2, %2 : vector<4x512xf32>
    %4 = arith.mulf %3, %3 : vector<4x512xf32>
    %5 = arith.mulf %3, %4 : vector<4x512xf32>
    %cst_1 = arith.constant 2.100000e+01 : f32
    %6 = vector.broadcast %cst_1 : f32 to vector<4x512xf32>
    %7 = arith.mulf %6, %2 : vector<4x512xf32>
    %cst_2 = arith.constant 4.800000e+01 : f32
    %8 = vector.broadcast %cst_2 : f32 to vector<4x512xf32>
    %9 = arith.subf %8, %7 : vector<4x512xf32>
    %10 = arith.mulf %2, %9 : vector<4x512xf32>
    %cst_3 = arith.constant -2.800000e+01 : f32
    %11 = vector.broadcast %cst_3 : f32 to vector<4x512xf32>
    %12 = arith.addf %11, %10 : vector<4x512xf32>
    %13 = arith.mulf %5, %12 : vector<4x512xf32>
    %cst_4 = arith.constant 1.000000e+00 : f32
    %14 = vector.broadcast %cst_4 : f32 to vector<4x512xf32>
    %15 = arith.addf %14, %13 : vector<4x512xf32>
    %cst_5 = arith.constant 1.000000e+00 : f32
    %16 = vector.broadcast %cst_5 : f32 to vector<4x512xf32>
    %17 = arith.cmpf olt, %2, %16 : vector<4x512xf32>
    %cst_6 = arith.constant 0.000000e+00 : f32
    %18 = vector.broadcast %cst_6 : f32 to vector<4x512xf32>
    %19 = arith.select %17, %15, %18 : vector<4x512xi1>, vector<4x512xf32>
    %c0_7 = arith.constant 0 : index
    %c0_8 = arith.constant 0 : index
    %20 = vector.load %arg2[%c0_7, %c0_8] : memref<4x512xf32, #tpu.memory_space<vmem>>, vector<4x512xf32>
    tpu.vector_store %arg2[%c0_7, %c0_8], %19 {strides = array<i32>} : memref<4x512xf32, #tpu.memory_space<vmem>>, vector<4x512xf32>,
    return
  }
  func.func @transform_0(%arg0: i32) -> (i32, i32) {
    %c0_i32 = arith.constant 0 : i32
    %c0_i32_0 = arith.constant 0 : i32
    return %arg0, %c0_i32 : i32, i32
  }
  func.func @transform_1(%arg0: i32) -> (i32, i32) {
    %c0_i32 = arith.constant 0 : i32
    %c0_i32_0 = arith.constant 0 : i32
    return %arg0, %c0_i32 : i32, i32
  }
}

</mosaic_0001>

<bundles_post_ra>
// kernel: tpu_custom_call.1
= control target key start
LH: loop header
LB: loop body
LE: loop exit
PB: predicated region body
PF: predicated region fallthrough
CT: control target
= control target key end

     0   :  { %6 = vsyncpa [#allocation3], 0  ;;  %s140_s0 = inlined_call_operand.hbm [shape: f32[4,512], index: 0, kind: input, shape index: {}]   ;;  %s141_s1 = inlined_call_operand.hbm [shape: f32[4,512], index: 1, kind: output, shape index: {}]  }
   0x1   :  { %7 = vsyncpa [#allocation4], 0  ;;  %s13_s8 = sshll.u32 %s140_s0, 4  ;;  %s122_s9 = smov [#allocation2]   ;;  %s14_s8 = int_to_ptr.hbm [resolvable:$true] %s13_s8 }
   0x2   :  { %s15_s10 = sshll.u32 %s122_s9, 4  ;;  %s16_s10 = int_to_ptr.vmem [resolvable:$true] %s15_s10 }
   0x3   :  { %18 = dma.hbm_to_vmem [thread:$0]  %s14_s8, 256, %s16_s10, [#allocation3]  }
   0x4   :  { %118 = dma.done.wait [#allocation3], 256  }
   0x5   :  { %119 = vsyncadd [#allocation3], 4294967040  ;;  %v23_v0 = vld [vmem:[#allocation2] sm:$0xff]  ;;  %v24_v1 = vld [vmem:[#allocation2 + $0x8] sm:$0xff]  ;;  %s123_s0 = smov [#allocation5]   ;;  %s58_s14 = sshll.u32 %s141_s1, 4  ;;  %s59_s14 = int_to_ptr.hbm [resolvable:$true] %s58_s14 }
   0x6   :  { %v25_v2 = vmul.f32 0.2, %v23_v0  ;;  %v26_v3 = vmul.f32 0.2, %v24_v1  ;;  %s56_s11 = sshll.u32 %s123_s0, 4  ;;  %s57_s11 = int_to_ptr.vmem [resolvable:$true] %s56_s11 }
   0x8   :  { %v27_v4 = vmul.f32 %v25_v2, %v25_v2  ;;  %v33_v5 = vmul.f32 21.0, %v25_v2  ;;  %v28_v6 = vmul.f32 %v26_v3, %v26_v3  ;;  %v34_v7 = vmul.f32 21.0, %v26_v3 }
   0x9   :  { %vm45_vm0 = vcmp.lt.f32.partialorder %v25_v2, 1.0  ;;  %vm46_vm1 = vcmp.lt.f32.partialorder %v26_v3, 1.0 }
   0xa   :  { %v29_v8 = vmul.f32 %v27_v4, %v27_v4  ;;  %v35_v9 = vsub.f32 48.0, %v33_v5  ;;  %v30_v10 = vmul.f32 %v28_v6, %v28_v6  ;;  %v36_v11 = vsub.f32 48.0, %v34_v7 }
   0xc   :  { %v31_v12 = vmul.f32 %v29_v8, %v27_v4  ;;  %v37_v13 = vmul.f32 %v35_v9, %v25_v2  ;;  %v32_v14 = vmul.f32 %v30_v10, %v28_v6  ;;  %v38_v15 = vmul.f32 %v36_v11, %v26_v3 }
   0xe   :  { %v39_v16 = vadd.f32 -28.0, %v37_v13  ;;  %v40_v17 = vadd.f32 -28.0, %v38_v15 }
  0x10   :  { %v41_v18 = vmul.f32 %v39_v16, %v31_v12  ;;  %v42_v19 = vmul.f32 %v40_v17, %v32_v14 }
  0x12   :  { %v43_v20 = vadd.f32 1.0, %v41_v18  ;;  %v44_v21 = vadd.f32 1.0, %v42_v19 }
  0x14   :  { %v47_v22 = vsel %vm45_vm0, %v43_v20, 0.0  ;;  %v48_v23 = vsel %vm46_vm1, %v44_v21, 0.0 }
  0x15   :  { %49 = vst [vmem:[#allocation5] sm:$0xff] %v47_v22 }
  0x16   :  { %50 = vst [vmem:[#allocation5 + $0x8] sm:$0xff] %v48_v23 }
  0x17   :  { %61 = dma.vmem_to_hbm [thread:$0]  %s57_s11, 256, %s59_s14, [#allocation4]  }
  0x18   :  { %120 = dma.done.wait [#allocation4], 256  }
  0x19   :  { %121 = vsyncadd [#allocation4], 4294967040 }
  0x1a   :  { %66 = vsyncpa [#allocation3], 1 }
  0x1b   :  { %67 = vsyncpa [#allocation4], 1 }

</bundles_post_ra>
